<compile_context>
chip_gen: v5e
topology: v5e:2x2
jax: 0.10.0
libtpu: 0.0.40
codegen_flags: <defaults>
</compile_context>

<pallas_src>
import functools
import math

import jax
import jax.numpy as jnp
from jax import lax
from jax.experimental import pallas as pl
from jax.experimental.pallas import tpu as pltpu


def _round_up(x, m):
    return ((x + m - 1) // m) * m


def _vmem_capacity_bytes():
    """Per-TensorCore VMEM capacity (generation-aware), conservative fallback."""
    try:
        info = pltpu.get_tpu_info()
        cap = int(getattr(info, "vmem_capacity_bytes", 0) or 0)
        if cap > 0:
            return cap
    except Exception:
        pass
    return 64 << 20  # smallest current generation (v7x per-TC)


# ---------------------------------------------------------------------------
# Path 1: VMEM-resident table, one-hot MXU gather, vocab-chunked accumulation.
# ---------------------------------------------------------------------------
def _embed_resident_kernel(ids_ref, table_ref, out_ref, acc_ref, *,
                           scale, vk, n_chunks, fold_scale):
    # ids_ref   : (tile, 1) int32 VMEM block (double-buffered by the pipeline)
    # table_ref : (V_pad, D) whole table, VMEM-resident (single copy)
    # out_ref   : (tile, D) lane-dense output block
    # acc_ref   : (tile, D) f32 accumulator scratch
    ids = ids_ref[...]                                    # (tile, 1)
    tile = out_ref.shape[0]
    tdt = table_ref.dtype
    hit = jnp.asarray(scale if fold_scale else 1.0, dtype=tdt)   # exact in f32
    miss = jnp.asarray(0.0, dtype=tdt)

    def chunk_rows(base):
        # One-hot gather of rows [base, base+vk) on the MXU:
        # (tile, vk) @ (vk, D) -> (tile, D), accumulated in f32.
        iota = base + lax.broadcasted_iota(jnp.int32, (tile, vk), 1)
        one_hot = jnp.where(ids == iota, hit, miss)
        return jnp.dot(one_hot, table_ref[pl.ds(base, vk), :],
                       preferred_element_type=jnp.float32)

    if n_chunks == 1:
        acc = chunk_rows(0)
    else:
        acc_ref[...] = jnp.zeros_like(acc_ref)

        def body(c, carry):
            base = pl.multiple_of(c * vk, vk)
            acc_ref[...] += chunk_rows(base)
            return carry

        lax.fori_loop(0, n_chunks, body, 0, unroll=(n_chunks <= 8))
        acc = acc_ref[...]

    if not fold_scale:
        acc = acc * scale
    out_ref[...] = acc.astype(out_ref.dtype)


# ---------------------------------------------------------------------------
# Path 2: HBM-resident table, per-row DMA gather (production vocab sizes).
# ---------------------------------------------------------------------------
_GATHER_SEMS = 8  # semaphore ring depth = in-flight row copies per tile


def _embed_gather_kernel(ids_ref, table_hbm, out_ref, row_buf, sem, *,
                         scale, tile, nsem):
    # ids_ref   : (n_pad,) int32 in SMEM (scalar prefetch)
    # table_hbm : (V, D) in HBM (memory_space=pl.ANY)
    # out_ref   : (tile, D) lane-dense VMEM output block
    # row_buf   : (tile, D) VMEM slab the gathered rows land in
    # sem       : (nsem,) DMA semaphore ring
    base = pl.program_id(0) * tile

    def row_copy(t):
        row = ids_ref[base + t]
        return pltpu.make_async_copy(table_hbm.at[pl.ds(row, 1)],
                                     row_buf.at[pl.ds(t, 1)],
                                     sem.at[t % nsem])

    def issue(t, carry):
        @pl.when(t >= nsem)
        def _():
            row_copy(t - nsem).wait()      # free this semaphore slot first
        row_copy(t).start()
        return carry

    lax.fori_loop(0, tile, issue, 0)

    def drain(i, carry):
        row_copy(tile - nsem + i).wait()
        return carry

    lax.fori_loop(0, nsem, drain, 0)

    # TODO(synk): double-buffer row_buf across grid steps so tile i+1's row
    # gathers overlap the scale+store of tile i.
    out_ref[...] = (row_buf[...].astype(jnp.float32) * scale).astype(out_ref.dtype)


# ---------------------------------------------------------------------------
# Wrapper
# ---------------------------------------------------------------------------
def input_embeddings(ids, emb_table, *, tok_tile=512, out_dtype=None,
                     force_gather=False):
    """Equivalent of `nn.Embedding(V, D)(x) * sqrt(D)` (InputEmbeddings.forward).

    Pass a bf16 `emb_table` for the native-rate MXU path / halved table VMEM,
    and `out_dtype=jnp.bfloat16` to halve output HBM write bytes.
    Out-of-range ids are not checked (nn.Embedding would raise): the resident
    path returns zero rows for them, the gather path would DMA out of bounds.
    """
    B, S = ids.shape
    V, D = emb_table.shape
    out_dtype = jnp.dtype(out_dtype) if out_dtype is not None else emb_table.dtype
    scale = math.sqrt(float(D))
    n_tok = B * S

    # Sublane-dense token tile; 512 amortizes per-grid-step overhead and gives
    # large unmasked output stores.
    tile = _round_up(min(tok_tile, _round_up(n_tok, 8)), 8)
    n_pad = _round_up(n_tok, tile)
    n_tiles = n_pad // tile

    flat_ids = ids.reshape(n_tok).astype(jnp.int32)
    if n_pad != n_tok:
        flat_ids = jnp.pad(flat_ids, (0, n_pad - n_tok))   # pads -> row 0, sliced off

    tbl_isz = jnp.dtype(emb_table.dtype).itemsize
    out_isz = out_dtype.itemsize

    # Vocab chunking for the resident path (keeps the MXU K dim >= 512 where
    # possible while bounding the (tile, vk) one-hot/iota temporaries).
    vk = min(512, _round_up(V, 8))
    v_pad = _round_up(V, vk)
    n_chunks = v_pad // vk

    # Generation-aware *per-TensorCore* VMEM budget (on v7x each TC keeps its
    # own resident copy, so the check is against per-TC capacity).
    budget = int(_vmem_capacity_bytes() * 0.75)
    resident_bytes = (
        v_pad * D * tbl_isz            # table, single-buffered (memory_space=VMEM)
        + 2 * tile * 128 * 4           # ids blocks (lane-padded), double-buffered
        + 2 * tile * D * out_isz       # output blocks, double-buffered
        + tile * D * 4                 # f32 accumulator scratch
        + 2 * tile * vk * 4            # in-flight iota + one-hot temporaries
        + (4 << 20)                    # slack / internal scratch
    )
    use_resident = (not force_gather) and resident_bytes <= budget

    if use_resident:
        table = emb_table
        if v_pad != V:                  # padded rows are never selected (ids < V)
            table = jnp.pad(table, ((0, v_pad - V), (0, 0)))
        fold_scale = table.dtype == jnp.float32   # bf16 keeps exact 0/1 one-hot
        kernel = functools.partial(_embed_resident_kernel, scale=scale, vk=vk,
                                   n_chunks=n_chunks, fold_scale=fold_scale)
        out_flat = pl.pallas_call(
            kernel,
            out_shape=jax.ShapeDtypeStruct((n_pad, D), out_dtype),
            grid=(n_tiles,),
            in_specs=[
                pl.BlockSpec((tile, 1), lambda i: (i, 0)),
                # Whole table resident in VMEM: one HBM->VMEM copy, no pipeline
                # double buffering (its index is invariant across the grid).
                pl.BlockSpec(memory_space=pltpu.MemorySpace.VMEM),
            ],
            out_specs=pl.BlockSpec((tile, D), lambda i: (i, 0)),
            scratch_shapes=[pltpu.VMEM((tile, D), jnp.float32)],
            compiler_params=pltpu.CompilerParams(
                dimension_semantics=("parallel",),
                vmem_limit_bytes=min(budget, max(resident_bytes, 32 << 20)),
            ),
        )(flat_ids.reshape(n_pad, 1), table)
    else:
        # TODO(synk): for very long sequences the scalar-prefetched ids array is
        # SMEM-resident; block ids per tile if SMEM capacity becomes the limit.
        nsem = min(_GATHER_SEMS, tile)
        gather_bytes = 2 * tile * D * out_isz + tile * D * tbl_isz + (4 << 20)
        kernel = functools.partial(_embed_gather_kernel, scale=scale, tile=tile,
                                   nsem=nsem)
        out_flat = pl.pallas_call(
            kernel,
            out_shape=jax.ShapeDtypeStruct((n_pad, D), out_dtype),
            grid_spec=pltpu.PrefetchScalarGridSpec(
                num_scalar_prefetch=1,                         # ids -> SMEM
                grid=(n_tiles,),
                in_specs=[pl.BlockSpec(memory_space=pl.ANY)],  # table stays in HBM
                out_specs=pl.BlockSpec((tile, D), lambda i, ids: (i, 0)),
                scratch_shapes=[
                    pltpu.VMEM((tile, D), emb_table.dtype),
                    pltpu.SemaphoreType.DMA((nsem,)),
                ],
            ),
            compiler_params=pltpu.CompilerParams(
                dimension_semantics=("parallel",),
                vmem_limit_bytes=min(budget, max(gather_bytes, 32 << 20)),
            ),
        )(flat_ids, emb_table)

    return out_flat[:n_tok].reshape(B, S, D)


if __name__ == "__main__":
    # Small, deterministic test shapes (vocab=32, d_model=128, batch=2, seq=8).
    vocab_size = 32
    d_model = 128
    batch, seq = 2, 8

    key = jax.random.PRNGKey(0)
    k_emb, k_ids = jax.random.split(key)

    # nn.Embedding default init ~ N(0, 1).
    emb_table = jax.random.normal(k_emb, (vocab_size, d_model), dtype=jnp.float32)
    ids = jax.random.randint(k_ids, (batch, seq), 0, vocab_size, dtype=jnp.int32)

    ref = emb_table[ids] * jnp.float32(math.sqrt(d_model))

    # Path 1: VMEM-resident table + one-hot MXU gather (auto-selected here).
    out = jax.block_until_ready(input_embeddings(ids, emb_table))
    assert out.shape == (batch, seq, d_model)
    assert jnp.allclose(out, ref, atol=1e-4, rtol=1e-5), "resident path mismatch"

    # Path 2: HBM table + per-row DMA gather (the production-vocab path).
    out_g = jax.block_until_ready(input_embeddings(ids, emb_table, force_gather=True))
    assert jnp.allclose(out_g, ref, atol=1e-5, rtol=1e-5), "gather path mismatch"

    print("KERNEL_OK")
</pallas_src>

<mosaic_0001>
module attributes {stable_mosaic.version = 11 : i64} {
  func.func @_embed_resident_kernel(%arg0: i32, %arg1: memref<16x1xi32, #tpu.memory_space<vmem>>, %arg2: memref<32x128xf32, #tpu.memory_space<vmem>>, %arg3: memref<16x128xf32, #tpu.memory_space<vmem>>, %arg4: memref<16x128xf32, #tpu.memory_space<vmem>>) attributes {dimension_semantics = [#tpu.dimension_semantics<parallel>], iteration_bounds = array<i64: 1>, scalar_prefetch = 0 : i64, scratch_operands = 1 : i64, tpu.core_type = #tpu.core_type<tc>, window_params = [{transform_indices = @transform_0, window_bounds = array<i64: 16, 1>}, {pipeline_mode = #tpu.pipeline_mode<synchronous>, transform_indices = @transform_1, window_bounds = array<i64: 32, 128>}, {transform_indices = @transform_2, window_bounds = array<i64: 16, 128>}]} {
    %c0 = arith.constant 0 : index
    %c0_0 = arith.constant 0 : index
    %0 = vector.load %arg1[%c0, %c0_0] : memref<16x1xi32, #tpu.memory_space<vmem>>, vector<16x1xi32>
    %1 = tpu.iota {dimensions = array<i32: 1>} : vector<16x32xi32>
    %c0_i32 = arith.constant 0 : i32
    %2 = vector.broadcast %c0_i32 : i32 to vector<16x32xi32>
    %3 = arith.addi %2, %1 : vector<16x32xi32>
    %4 = vector.broadcast %0 : vector<16x1xi32> to vector<16x32xi32>
    %5 = arith.cmpi eq, %4, %3 : vector<16x32xi32>
    %cst = arith.constant 11.3137083 : f32
    %cst_1 = arith.constant 0.000000e+00 : f32
    %6 = vector.broadcast %cst : f32 to vector<16x32xf32>
    %7 = vector.broadcast %cst_1 : f32 to vector<16x32xf32>
    %8 = arith.select %5, %6, %7 : vector<16x32xi1>, vector<16x32xf32>
    %c0_2 = arith.constant 0 : index
    %c0_3 = arith.constant 0 : index
    %9 = vector.load %arg2[%c0_2, %c0_3] : memref<32x128xf32, #tpu.memory_space<vmem>>, vector<32x128xf32>
    %cst_4 = arith.constant dense<0.000000e+00> : vector<16x128xf32>
    %10 = tpu.matmul %8, %9, %cst_4 {dimension_numbers = #tpu.dot_dimension_numbers<[1], [0], [0], [1], [0, 0, 1, 1], [], []>} : vector<16x32xf32>, vector<32x128xf32>, vector<16x128xf32> -> vector<16x128xf32>
    %c0_5 = arith.constant 0 : index
    %c0_6 = arith.constant 0 : index
    %11 = vector.load %arg3[%c0_5, %c0_6] : memref<16x128xf32, #tpu.memory_space<vmem>>, vector<16x128xf32>
    tpu.vector_store %arg3[%c0_5, %c0_6], %10 {strides = array<i32>} : memref<16x128xf32, #tpu.memory_space<vmem>>, vector<16x128xf32>,
    return
  }
  func.func @transform_0(%arg0: i32) -> (i32, i32) {
    %c0_i32 = arith.constant 0 : i32
    %c0_i32_0 = arith.constant 0 : i32
    return %arg0, %c0_i32 : i32, i32
  }
  func.func @transform_1(%arg0: i32) -> (i32, i32) {
    %c0_i32 = arith.constant 0 : i32
    %c0_i32_0 = arith.constant 0 : i32
    %c0_i32_1 = arith.constant 0 : i32
    return %c0_i32, %c0_i32_0 : i32, i32
  }
  func.func @transform_2(%arg0: i32) -> (i32, i32) {
    %c0_i32 = arith.constant 0 : i32
    %c0_i32_0 = arith.constant 0 : i32
    return %arg0, %c0_i32 : i32, i32
  }
}

</mosaic_0001>

<bundles_post_ra>
// kernel: tpu_custom_call.1
= control target key start
LH: loop header
LB: loop body
LE: loop exit
PB: predicated region body
PF: predicated region fallthrough
CT: control target
= control target key end

     0   :  { %7 = vsyncpa [#allocation4], 0  ;;  %s201_s0 = inlined_call_operand.vmem [shape: s32[16,1], index: 0, kind: input, shape index: {}]   ;;  %s202_s1 = inlined_call_operand.hbm [shape: f32[32,128], index: 1, kind: input, shape index: {}]   ;;  %s203_s2 = inlined_call_operand.hbm [shape: f32[16,128], index: 2, kind: output, shape index: {}]  }
   0x1   :  { %8 = vsyncpa [#allocation5], 0  ;;  %s15_s11 = sshll.u32 %s202_s1, 4  ;;  %s162_s12 = smov [#allocation3]   ;;  %s16_s11 = int_to_ptr.hbm [resolvable:$true] %s15_s11 }
   0x2   :  { %s17_s13 = sshll.u32 %s162_s12, 4  ;;  %s163_s14 = smov 128   ;;  %s18_s13 = int_to_ptr.vmem [resolvable:$true] %s17_s13 }
   0x3   :  { %s164_s15 = smov 8  }
   0x4   :  { %23 = dma.hbm_to_vmem [thread:$0]  %s16_s11, 512, %s18_s13, [#allocation4], %s163_s14, %s163_s14, %s164_s15  }
   0x5   :  { %158 = dma.done.wait [#allocation4], 512  }
   0x6   :  { %159 = vsyncadd [#allocation4], 4294966784  ;;  %v165_v0 = vmov 0   ;;  %v28_v1 = vld [vmem:[%s201_s0] sm:$0xff]  ;;  %v45_v2 = vld [vmem:[#allocation3 + $0x18] sm:$0xff]  ;;  %v30_v7 = vlaneseq  ;;  %vm46_vm0 = vcmask 261120  }
   0x7   :  { %109 = vset.pattern.permute.xlu0 %v165_v0  ;;  %65 = vmatpush.msra.mxu0 %v45_v2  ;;  %v44_v3 = vld [vmem:[#allocation3 + $0x10] sm:$0xff]  ;;  %v43_v4 = vld [vmem:[#allocation3 + $0x8] sm:$0xff]  ;;  %v42_v6 = vld [vmem:[#allocation3] sm:$0xff]  ;;  %v166_v10 = vmov 0.0   ;;  %s84_s22 = sshll.u32 %s203_s2, 4  ;;  %s85_s22 = int_to_ptr.hbm [resolvable:$true] %s84_s22 }
   0x8   :  { %33 = vperm.xlu0 %109, %v28_v1   ;;  %99 = vmatpush.msra.mxu1 %v45_v2  ;;  %v29_v5 = vld [vmem:[%s201_s0 + $0x8] sm:$0xff]  ;;  %v31_v8 = vand.u32 127, %v30_v7  ;;  %s167_s0 = smov [#allocation6]  }
   0x9   :  { %66 = vmatpush.msra.mxu0 %v44_v3  ;;  %s82_s19 = sshll.u32 %s167_s0, 4  ;;  %s83_s19 = int_to_ptr.vmem [resolvable:$true] %s82_s19 }
   0xa   :  { %100 = vmatpush.msra.mxu1 %v44_v3 }
   0xb   :  { %67 = vmatpush.msra.mxu0 %v43_v4 }
   0xc   :  { %101 = vmatpush.msra.mxu1 %v43_v4 }
   0xd   :  { %68 = vmatpush.msra.mxu0 %v42_v6 }
   0xe   :  { %102 = vmatpush.msra.mxu1 %v42_v6 }
  0x10   :  { %36 = vperm.xlu0 %109, %v29_v5  }
  0x7a   :  { %v34_v9 = vpop.permute.xlu0 %33 }
  0x7b   :  { %vm38_vm1 = vcmp.eq.s32.totalorder %v34_v9, %v31_v8 }
  0x7c   :  { %v40_v11 = vsel %vm38_vm1, 11.313708, %v166_v10 }
  0x7d   :  { %97 = vmatmul.msk.f32.vlgmr.msra.gmra.mxu0 %vm46_vm0, %v40_v11 }
  0x82   :  { %v37_v12 = vpop.permute.xlu0 %36 }
  0x83   :  { %vm39_vm2 = vcmp.eq.s32.totalorder %v37_v12, %v31_v8 }
  0x84   :  { %v41_v13 = vsel %vm39_vm2, 11.313708, %v166_v10 }
  0x85   :  { %98 = vmatmul.msk.f32.vlgmr.msra.gmra.mxu1 %vm46_vm0, %v41_v13 }
  0xfa   :  { %v70_v14 = vpop.f32.mrf.mxu0 }
  0xfb   :  { %76 = vst [vmem:[#allocation6] sm:$0xff] %v70_v14 }
 0x102   :  { %v73_v15 = vpop.f32.mrf.mxu1 }
 0x103   :  { %77 = vst [vmem:[#allocation6 + $0x8] sm:$0xff] %v73_v15 }
 0x104   :  { %90 = dma.vmem_to_hbm [thread:$0]  %s83_s19, 256, %s85_s22, [#allocation5], %s163_s14, %s163_s14, %s164_s15  }
 0x105   :  { %160 = dma.done.wait [#allocation5], 256  }
 0x106   :  { %161 = vsyncadd [#allocation5], 4294967040 }
 0x107   :  { %95 = vsyncpa [#allocation4], 1 }
 0x108   :  { %96 = vsyncpa [#allocation5], 1 }

</bundles_post_ra>
